<compile_context>
chip_gen: v5e
topology: v5e:2x2
jax: 0.10.0
libtpu: 0.0.40
codegen_flags: <defaults>
</compile_context>

<pallas_src>
import jax
import jax.numpy as jnp
from jax.experimental import pallas as pl
from jax.experimental.pallas import tpu as pltpu

MESH_DIM = 1
MESH_STEPS = 2                      # UpsampleModule defaults
RATIO = MESH_STEPS ** MESH_DIM      # use_random_mesh=False path
H1, H2, H3, OUT = 128, 128, 64, 3


def _round_up(a, m):
    return (a + m - 1) // m * m


def get_mesh(dim=1, steps=2):
    # 1-D mesh of `steps` points in [-0.2, 0.2] -> shape (dim, steps**dim)
    assert dim == 1  # TODO(synk): general N-D meshgrid for mesh_dim > 1
    return jnp.linspace(-0.2, 0.2, steps, dtype=jnp.float32)[None, :]


def init_params(key, feature_dim):
    """Deterministic init of the 4 FullyConnected (Linear) layers (f32)."""
    dims = [(feature_dim + MESH_DIM, H1), (H1, H2), (H2, H3), (H3, OUT)]
    params = []
    for i, (fin, fout) in enumerate(dims):
        kw, kb = jax.random.split(jax.random.fold_in(key, i))
        bound = 1.0 / float(jnp.sqrt(float(fin)))
        w = jax.random.uniform(kw, (fin, fout), jnp.float32, -bound, bound)
        b = jax.random.uniform(kb, (1, fout), jnp.float32, -bound, bound)
        params += [w, b]
    return params


def folding_kernel(x_ref, pos_ref, mesh_ref,
                   w1x_ref, w1m_ref, b1_ref,
                   w2_ref, b2_ref, w3_ref, b3_ref, w4_ref, b4_ref,
                   o_ref):
    """4-layer folding MLP (relu, relu, relu, none) + residual add of pos.

    Mesh coordinate (the last layer-1 input feature) is applied as a rank-1
    update on the VPU, avoiding any in-kernel concat / lane relayout.
    """
    x = x_ref[...]          # (trow, d)  f32
    pos = pos_ref[...]      # (trow, 3)  f32
    mesh = mesh_ref[...]    # (trow, 1)  f32

    cdt = w1x_ref.dtype     # bf16 (default) or f32 -> MXU operand dtype

    h = jnp.dot(x.astype(cdt), w1x_ref[...],
                preferred_element_type=jnp.float32)
    h = h + mesh * w1m_ref[...] + b1_ref[...]
    h = jnp.maximum(h, 0.0)

    h = jnp.dot(h.astype(cdt), w2_ref[...],
                preferred_element_type=jnp.float32) + b2_ref[...]
    h = jnp.maximum(h, 0.0)

    h = jnp.dot(h.astype(cdt), w3_ref[...],
                preferred_element_type=jnp.float32) + b3_ref[...]
    h = jnp.maximum(h, 0.0)

    r = jnp.dot(h.astype(cdt), w4_ref[...],
                preferred_element_type=jnp.float32) + b4_ref[...]

    # Output kept (trow, 3): store traffic is a tiny fraction of tile cycles
    # here; an in-kernel (trow,3)->(3,trow) transpose is not worth the risk.
    o_ref[...] = (pos + r).astype(o_ref.dtype)


def upsample_forward(pos, x, params, mesh_vals, *, tile_rows=512, use_bf16=True):
    """pos: (B, N, 3), x: (B, N, d), mesh_vals: (R,)  ->  (B, R*N, 3)"""
    B, N, d = x.shape
    R = int(mesh_vals.shape[0])

    w1, b1, w2, b2, w3, b3, w4, b4 = params
    w1x, w1m = w1[:d, :], w1[d:, :]          # split the mesh row out of W1

    if use_bf16:
        # bf16 MXU operands, f32 accumulation; bias/ReLU path stays f32
        # (also the right split for v5e which has no bf16 VPU/EUP).
        w1x_c = w1x.astype(jnp.bfloat16)
        w2_c = w2.astype(jnp.bfloat16)
        w3_c = w3.astype(jnp.bfloat16)
        w4_c = w4.astype(jnp.bfloat16)
    else:
        w1x_c, w2_c, w3_c, w4_c = w1x, w2, w3, w4

    # Big row tiles amortize per-step pipeline overhead and MXU weight
    # reloads; pad only the original N axis and only when needed.
    trow = min(_round_up(int(tile_rows), 8), _round_up(N, 8))
    n_pad = _round_up(N, trow)
    if n_pad != N:
        x_in = jnp.pad(x, ((0, 0), (0, n_pad - N), (0, 0)))
        pos_in = jnp.pad(pos, ((0, 0), (0, n_pad - N), (0, 0)))
    else:
        x_in, pos_in = x, pos

    # Mesh coordinate of expanded row k = c*N + j is mesh[(c*N + j) % R].
    # (R, n_pad, 1) is a few KB regardless of batch size.
    c_idx = jnp.arange(R, dtype=jnp.int32)[:, None]
    j_idx = jnp.arange(n_pad, dtype=jnp.int32)[None, :]
    mesh_col = mesh_vals.astype(jnp.float32)[(c_idx * N + j_idx) % R][..., None]

    # Copy axis innermost: consecutive grid steps reuse the same x/pos block.
    grid = (B, n_pad // trow, R)

    def full_spec(a):
        return pl.BlockSpec(a.shape, lambda b, j, c: (0,) * a.ndim)

    out = pl.pallas_call(
        folding_kernel,
        out_shape=jax.ShapeDtypeStruct((B, R, n_pad, 3), jnp.float32),
        grid_spec=pltpu.PrefetchScalarGridSpec(
            num_scalar_prefetch=0,
            grid=grid,
            in_specs=[
                pl.BlockSpec((None, trow, d), lambda b, j, c: (b, j, 0)),
                pl.BlockSpec((None, trow, 3), lambda b, j, c: (b, j, 0)),
                pl.BlockSpec((None, trow, 1), lambda b, j, c: (c, j, 0)),
                full_spec(w1x_c), full_spec(w1m), full_spec(b1),
                full_spec(w2_c), full_spec(b2),
                full_spec(w3_c), full_spec(b3),
                full_spec(w4_c), full_spec(b4),
            ],
            out_specs=pl.BlockSpec((None, None, trow, 3),
                                   lambda b, j, c: (b, c, j, 0)),
        ),
        compiler_params=pltpu.CompilerParams(
            dimension_semantics=("parallel", "parallel", "arbitrary")),
    )(x_in, pos_in, mesh_col,
      w1x_c, w1m, b1, w2_c, b2, w3_c, b3, w4_c, b4)

    # (B, R, n_pad, 3) -> (B, R*N, 3); row k = c*N + j matches the PyTorch
    # repeat / transpose / reshape ordering exactly.
    return out[:, :, :N, :].reshape(B, R * N, 3)


def upsample_reference(pos, x, params, mesh_vals, *, use_bf16=True):
    """Pure-JAX reference matching the PyTorch forward (same operand dtype)."""
    B, N, d = x.shape
    R = int(mesh_vals.shape[0])
    w1, b1, w2, b2, w3, b3, w4, b4 = params
    w1x, w1m = w1[:d, :], w1[d:, :]
    cast = (lambda a: a.astype(jnp.bfloat16)) if use_bf16 else (lambda a: a)

    x_tiled = jnp.tile(x, (1, R, 1))                  # row k -> x[k % N]
    pos_tiled = jnp.tile(pos, (1, R, 1))              # row k -> pos[k % N]
    k = jnp.arange(R * N)
    mesh_col = mesh_vals[k % R][None, :, None].astype(jnp.float32)  # mesh[k % R]

    h = jnp.dot(cast(x_tiled), cast(w1x), preferred_element_type=jnp.float32)
    h = jnp.maximum(h + mesh_col * w1m + b1, 0.0)
    h = jnp.maximum(
        jnp.dot(cast(h), cast(w2), preferred_element_type=jnp.float32) + b2, 0.0)
    h = jnp.maximum(
        jnp.dot(cast(h), cast(w3), preferred_element_type=jnp.float32) + b3, 0.0)
    r = jnp.dot(cast(h), cast(w4), preferred_element_type=jnp.float32) + b4
    return pos_tiled + r


if __name__ == "__main__":
    key = jax.random.PRNGKey(0)
    kpos, kx, kparam = jax.random.split(key, 3)

    B, N, feature_dim = 2, 64, 8
    pos = jax.random.normal(kpos, (B, N, 3), jnp.float32)
    x = jax.random.normal(kx, (B, N, feature_dim), jnp.float32)
    params = init_params(kparam, feature_dim)
    mesh_vals = get_mesh(MESH_DIM, MESH_STEPS)[0]     # (RATIO,)

    out = upsample_forward(pos, x, params, mesh_vals)
    out = jax.block_until_ready(out)

    assert out.shape == (B, RATIO * N, 3), out.shape

    # Tight check vs a reference using the same bf16-operand / f32-accum math.
    ref_q = upsample_reference(pos, x, params, mesh_vals, use_bf16=True)
    assert jnp.allclose(out, ref_q, atol=1e-4, rtol=1e-4), \
        float(jnp.max(jnp.abs(out - ref_q)))

    # Loose check vs the pure-f32 PyTorch-equivalent math (bf16 operand error).
    ref_f = upsample_reference(pos, x, params, mesh_vals, use_bf16=False)
    assert jnp.allclose(out, ref_f, atol=5e-2, rtol=0.0), \
        float(jnp.max(jnp.abs(out - ref_f)))

    print("KERNEL_OK")
</pallas_src>

<mosaic_0001>
module attributes {stable_mosaic.version = 11 : i64} {
  func.func @folding_kernel(%arg0: i32, %arg1: i32, %arg2: i32, %arg3: memref<1x64x8xf32, #tpu.memory_space<vmem>>, %arg4: memref<1x64x3xf32, #tpu.memory_space<vmem>>, %arg5: memref<1x64x1xf32, #tpu.memory_space<vmem>>, %arg6: memref<8x128xbf16, #tpu.memory_space<vmem>>, %arg7: memref<1x128xf32, #tpu.memory_space<vmem>>, %arg8: memref<1x128xf32, #tpu.memory_space<vmem>>, %arg9: memref<128x128xbf16, #tpu.memory_space<vmem>>, %arg10: memref<1x128xf32, #tpu.memory_space<vmem>>, %arg11: memref<128x64xbf16, #tpu.memory_space<vmem>>, %arg12: memref<1x64xf32, #tpu.memory_space<vmem>>, %arg13: memref<64x3xbf16, #tpu.memory_space<vmem>>, %arg14: memref<1x3xf32, #tpu.memory_space<vmem>>, %arg15: memref<1x1x64x3xf32, #tpu.memory_space<vmem>>) attributes {dimension_semantics = [#tpu.dimension_semantics<parallel>, #tpu.dimension_semantics<parallel>, #tpu.dimension_semantics<arbitrary>], iteration_bounds = array<i64: 2, 1, 2>, scalar_prefetch = 0 : i64, scratch_operands = 0 : i64, tpu.core_type = #tpu.core_type<tc>, window_params = [{transform_indices = @transform_0, window_bounds = array<i64: 1, 64, 8>}, {transform_indices = @transform_1, window_bounds = array<i64: 1, 64, 3>}, {transform_indices = @transform_2, window_bounds = array<i64: 1, 64, 1>}, {pipeline_mode = #tpu.pipeline_mode<synchronous>, transform_indices = @transform_3, window_bounds = array<i64: 8, 128>}, {pipeline_mode = #tpu.pipeline_mode<synchronous>, transform_indices = @transform_4, window_bounds = array<i64: 1, 128>}, {pipeline_mode = #tpu.pipeline_mode<synchronous>, transform_indices = @transform_5, window_bounds = array<i64: 1, 128>}, {pipeline_mode = #tpu.pipeline_mode<synchronous>, transform_indices = @transform_6, window_bounds = array<i64: 128, 128>}, {pipeline_mode = #tpu.pipeline_mode<synchronous>, transform_indices = @transform_7, window_bounds = array<i64: 1, 128>}, {pipeline_mode = #tpu.pipeline_mode<synchronous>, transform_indices = @transform_8, window_bounds = array<i64: 128, 64>}, {pipeline_mode = #tpu.pipeline_mode<synchronous>, transform_indices = @transform_9, window_bounds = array<i64: 1, 64>}, {pipeline_mode = #tpu.pipeline_mode<synchronous>, transform_indices = @transform_10, window_bounds = array<i64: 64, 3>}, {pipeline_mode = #tpu.pipeline_mode<synchronous>, transform_indices = @transform_11, window_bounds = array<i64: 1, 3>}, {transform_indices = @transform_12, window_bounds = array<i64: 1, 1, 64, 3>}]} {
    %c0 = arith.constant 0 : index
    %c0_0 = arith.constant 0 : index
    %c0_1 = arith.constant 0 : index
    %0 = vector.load %arg3[%c0, %c0_0, %c0_1] : memref<1x64x8xf32, #tpu.memory_space<vmem>>, vector<1x64x8xf32>
    %1 = vector.shape_cast %0 : vector<1x64x8xf32> to vector<64x8xf32>
    %c0_2 = arith.constant 0 : index
    %c0_3 = arith.constant 0 : index
    %c0_4 = arith.constant 0 : index
    %2 = vector.load %arg4[%c0_2, %c0_3, %c0_4] : memref<1x64x3xf32, #tpu.memory_space<vmem>>, vector<1x64x3xf32>
    %3 = vector.shape_cast %2 : vector<1x64x3xf32> to vector<64x3xf32>
    %c0_5 = arith.constant 0 : index
    %c0_6 = arith.constant 0 : index
    %c0_7 = arith.constant 0 : index
    %4 = vector.load %arg5[%c0_5, %c0_6, %c0_7] : memref<1x64x1xf32, #tpu.memory_space<vmem>>, vector<1x64x1xf32>
    %5 = vector.shape_cast %4 : vector<1x64x1xf32> to vector<64x1xf32>
    %6 = arith.truncf %1 : vector<64x8xf32> to vector<64x8xbf16>
    %c0_8 = arith.constant 0 : index
    %c0_9 = arith.constant 0 : index
    %7 = vector.load %arg6[%c0_8, %c0_9] : memref<8x128xbf16, #tpu.memory_space<vmem>>, vector<8x128xbf16>
    %cst = arith.constant dense<0.000000e+00> : vector<64x128xf32>
    %8 = tpu.matmul %6, %7, %cst {dimension_numbers = #tpu.dot_dimension_numbers<[1], [0], [0], [1], [0, 0, 1, 1], [], []>} : vector<64x8xbf16>, vector<8x128xbf16>, vector<64x128xf32> -> vector<64x128xf32>
    %c0_10 = arith.constant 0 : index
    %c0_11 = arith.constant 0 : index
    %9 = vector.load %arg7[%c0_10, %c0_11] : memref<1x128xf32, #tpu.memory_space<vmem>>, vector<1x128xf32>
    %10 = vector.broadcast %5 : vector<64x1xf32> to vector<64x128xf32>
    %11 = vector.broadcast %9 : vector<1x128xf32> to vector<64x128xf32>
    %12 = arith.mulf %10, %11 : vector<64x128xf32>
    %13 = arith.addf %8, %12 : vector<64x128xf32>
    %c0_12 = arith.constant 0 : index
    %c0_13 = arith.constant 0 : index
    %14 = vector.load %arg8[%c0_12, %c0_13] : memref<1x128xf32, #tpu.memory_space<vmem>>, vector<1x128xf32>
    %15 = vector.broadcast %14 : vector<1x128xf32> to vector<64x128xf32>
    %16 = arith.addf %13, %15 : vector<64x128xf32>
    %cst_14 = arith.constant 0.000000e+00 : f32
    %17 = vector.broadcast %cst_14 : f32 to vector<64x128xf32>
    %18 = arith.maximumf %16, %17 : vector<64x128xf32>
    %19 = arith.truncf %18 : vector<64x128xf32> to vector<64x128xbf16>
    %c0_15 = arith.constant 0 : index
    %c0_16 = arith.constant 0 : index
    %20 = vector.load %arg9[%c0_15, %c0_16] : memref<128x128xbf16, #tpu.memory_space<vmem>>, vector<128x128xbf16>
    %cst_17 = arith.constant dense<0.000000e+00> : vector<64x128xf32>
    %21 = tpu.matmul %19, %20, %cst_17 {dimension_numbers = #tpu.dot_dimension_numbers<[1], [0], [0], [1], [0, 0, 1, 1], [], []>} : vector<64x128xbf16>, vector<128x128xbf16>, vector<64x128xf32> -> vector<64x128xf32>
    %c0_18 = arith.constant 0 : index
    %c0_19 = arith.constant 0 : index
    %22 = vector.load %arg10[%c0_18, %c0_19] : memref<1x128xf32, #tpu.memory_space<vmem>>, vector<1x128xf32>
    %23 = vector.broadcast %22 : vector<1x128xf32> to vector<64x128xf32>
    %24 = arith.addf %21, %23 : vector<64x128xf32>
    %cst_20 = arith.constant 0.000000e+00 : f32
    %25 = vector.broadcast %cst_20 : f32 to vector<64x128xf32>
    %26 = arith.maximumf %24, %25 : vector<64x128xf32>
    %27 = arith.truncf %26 : vector<64x128xf32> to vector<64x128xbf16>
    %c0_21 = arith.constant 0 : index
    %c0_22 = arith.constant 0 : index
    %28 = vector.load %arg11[%c0_21, %c0_22] : memref<128x64xbf16, #tpu.memory_space<vmem>>, vector<128x64xbf16>
    %cst_23 = arith.constant dense<0.000000e+00> : vector<64x64xf32>
    %29 = tpu.matmul %27, %28, %cst_23 {dimension_numbers = #tpu.dot_dimension_numbers<[1], [0], [0], [1], [0, 0, 1, 1], [], []>} : vector<64x128xbf16>, vector<128x64xbf16>, vector<64x64xf32> -> vector<64x64xf32>
    %c0_24 = arith.constant 0 : index
    %c0_25 = arith.constant 0 : index
    %30 = vector.load %arg12[%c0_24, %c0_25] : memref<1x64xf32, #tpu.memory_space<vmem>>, vector<1x64xf32>
    %31 = vector.broadcast %30 : vector<1x64xf32> to vector<64x64xf32>
    %32 = arith.addf %29, %31 : vector<64x64xf32>
    %cst_26 = arith.constant 0.000000e+00 : f32
    %33 = vector.broadcast %cst_26 : f32 to vector<64x64xf32>
    %34 = arith.maximumf %32, %33 : vector<64x64xf32>
    %35 = arith.truncf %34 : vector<64x64xf32> to vector<64x64xbf16>
    %c0_27 = arith.constant 0 : index
    %c0_28 = arith.constant 0 : index
    %36 = vector.load %arg13[%c0_27, %c0_28] : memref<64x3xbf16, #tpu.memory_space<vmem>>, vector<64x3xbf16>
    %cst_29 = arith.constant dense<0.000000e+00> : vector<64x3xf32>
    %37 = tpu.matmul %35, %36, %cst_29 {dimension_numbers = #tpu.dot_dimension_numbers<[1], [0], [0], [1], [0, 0, 1, 1], [], []>} : vector<64x64xbf16>, vector<64x3xbf16>, vector<64x3xf32> -> vector<64x3xf32>
    %c0_30 = arith.constant 0 : index
    %c0_31 = arith.constant 0 : index
    %38 = vector.load %arg14[%c0_30, %c0_31] : memref<1x3xf32, #tpu.memory_space<vmem>>, vector<1x3xf32>
    %39 = vector.broadcast %38 : vector<1x3xf32> to vector<64x3xf32>
    %40 = arith.addf %37, %39 : vector<64x3xf32>
    %41 = arith.addf %3, %40 : vector<64x3xf32>
    %c0_32 = arith.constant 0 : index
    %c0_33 = arith.constant 0 : index
    %c0_34 = arith.constant 0 : index
    %c0_35 = arith.constant 0 : index
    %42 = vector.load %arg15[%c0_32, %c0_33, %c0_34, %c0_35] : memref<1x1x64x3xf32, #tpu.memory_space<vmem>>, vector<1x1x64x3xf32>
    %43 = vector.shape_cast %42 : vector<1x1x64x3xf32> to vector<64x3xf32>
    %44 = vector.shape_cast %41 : vector<64x3xf32> to vector<1x1x64x3xf32>
    tpu.vector_store %arg15[%c0_32, %c0_33, %c0_34, %c0_35], %44 {strides = array<i32>} : memref<1x1x64x3xf32, #tpu.memory_space<vmem>>, vector<1x1x64x3xf32>,
    return
  }
  func.func @transform_0(%arg0: i32, %arg1: i32, %arg2: i32) -> (i32, i32, i32) {
    %c0_i32 = arith.constant 0 : i32
    %c0_i32_0 = arith.constant 0 : i32
    return %arg0, %arg1, %c0_i32 : i32, i32, i32
  }
  func.func @transform_1(%arg0: i32, %arg1: i32, %arg2: i32) -> (i32, i32, i32) {
    %c0_i32 = arith.constant 0 : i32
    %c0_i32_0 = arith.constant 0 : i32
    return %arg0, %arg1, %c0_i32 : i32, i32, i32
  }
  func.func @transform_2(%arg0: i32, %arg1: i32, %arg2: i32) -> (i32, i32, i32) {
    %c0_i32 = arith.constant 0 : i32
    %c0_i32_0 = arith.constant 0 : i32
    return %arg2, %arg1, %c0_i32 : i32, i32, i32
  }
  func.func @transform_3(%arg0: i32, %arg1: i32, %arg2: i32) -> (i32, i32) {
    %c0_i32 = arith.constant 0 : i32
    %c0_i32_0 = arith.constant 0 : i32
    %c0_i32_1 = arith.constant 0 : i32
    return %c0_i32, %c0_i32_0 : i32, i32
  }
  func.func @transform_4(%arg0: i32, %arg1: i32, %arg2: i32) -> (i32, i32) {
    %c0_i32 = arith.constant 0 : i32
    %c0_i32_0 = arith.constant 0 : i32
    %c0_i32_1 = arith.constant 0 : i32
    return %c0_i32, %c0_i32_0 : i32, i32
  }
  func.func @transform_5(%arg0: i32, %arg1: i32, %arg2: i32) -> (i32, i32) {
    %c0_i32 = arith.constant 0 : i32
    %c0_i32_0 = arith.constant 0 : i32
    %c0_i32_1 = arith.constant 0 : i32
    return %c0_i32, %c0_i32_0 : i32, i32
  }
  func.func @transform_6(%arg0: i32, %arg1: i32, %arg2: i32) -> (i32, i32) {
    %c0_i32 = arith.constant 0 : i32
    %c0_i32_0 = arith.constant 0 : i32
    %c0_i32_1 = arith.constant 0 : i32
    return %c0_i32, %c0_i32_0 : i32, i32
  }
  func.func @transform_7(%arg0: i32, %arg1: i32, %arg2: i32) -> (i32, i32) {
    %c0_i32 = arith.constant 0 : i32
    %c0_i32_0 = arith.constant 0 : i32
    %c0_i32_1 = arith.constant 0 : i32
    return %c0_i32, %c0_i32_0 : i32, i32
  }
  func.func @transform_8(%arg0: i32, %arg1: i32, %arg2: i32) -> (i32, i32) {
    %c0_i32 = arith.constant 0 : i32
    %c0_i32_0 = arith.constant 0 : i32
    %c0_i32_1 = arith.constant 0 : i32
    return %c0_i32, %c0_i32_0 : i32, i32
  }
  func.func @transform_9(%arg0: i32, %arg1: i32, %arg2: i32) -> (i32, i32) {
    %c0_i32 = arith.constant 0 : i32
    %c0_i32_0 = arith.constant 0 : i32
    %c0_i32_1 = arith.constant 0 : i32
    return %c0_i32, %c0_i32_0 : i32, i32
  }
  func.func @transform_10(%arg0: i32, %arg1: i32, %arg2: i32) -> (i32, i32) {
    %c0_i32 = arith.constant 0 : i32
    %c0_i32_0 = arith.constant 0 : i32
    %c0_i32_1 = arith.constant 0 : i32
    return %c0_i32, %c0_i32_0 : i32, i32
  }
  func.func @transform_11(%arg0: i32, %arg1: i32, %arg2: i32) -> (i32, i32) {
    %c0_i32 = arith.constant 0 : i32
    %c0_i32_0 = arith.constant 0 : i32
    %c0_i32_1 = arith.constant 0 : i32
    return %c0_i32, %c0_i32_0 : i32, i32
  }
  func.func @transform_12(%arg0: i32, %arg1: i32, %arg2: i32) -> (i32, i32, i32, i32) {
    %c0_i32 = arith.constant 0 : i32
    %c0_i32_0 = arith.constant 0 : i32
    return %arg0, %arg2, %arg1, %c0_i32 : i32, i32, i32, i32
  }
}

</mosaic_0001>

<bundles_post_ra>
// kernel: tpu_custom_call.1
= control target key start
LH: loop header
LB: loop body
LE: loop exit
PB: predicated region body
PF: predicated region fallthrough
CT: control target
= control target key end

     0   :  { %s1434_s21 = smov 0   ;;  %s1436_s22 = smov 0   ;;  %s1616_s0 = inlined_call_operand.vmem [shape: f32[2,64,8], index: 0, kind: input, shape index: {}]   ;;  %s1617_s1 = inlined_call_operand.vmem [shape: f32[2,64,3], index: 1, kind: input, shape index: {}]   ;;  %s1618_s2 = inlined_call_operand.vmem [shape: f32[2,64,1], index: 2, kind: input, shape index: {}]   ;;  %s1619_s3 = inlined_call_operand.vmem [shape: bf16[8,128], index: 3, kind: input, shape index: {}]   ;;  %s1620_s4 = inlined_call_operand.vmem [shape: f32[1,128], index: 4, kind: input, shape index: {}]   ;;  %s1621_s5 = inlined_call_operand.vmem [shape: f32[1,128], index: 5, kind: input, shape index: {}]   ;;  %s1622_s6 = inlined_call_operand.vmem [shape: bf16[128,128], index: 6, kind: input, shape index: {}]   ;;  %s1623_s7 = inlined_call_operand.vmem [shape: f32[1,128], index: 7, kind: input, shape index: {}]   ;;  %s1624_s8 = inlined_call_operand.vmem [shape: bf16[128,64], index: 8, kind: input, shape index: {}]   ;;  %s1625_s9 = inlined_call_operand.vmem [shape: f32[1,64], index: 9, kind: input, shape index: {}]   ;;  %s1626_s10 = inlined_call_operand.vmem [shape: bf16[64,3], index: 10, kind: input, shape index: {}]   ;;  %s1627_s11 = inlined_call_operand.vmem [shape: f32[1,3], index: 11, kind: input, shape index: {}]   ;;  %s1628_s12 = inlined_call_operand.vmem [shape: f32[2,2,64,3], index: 12, kind: output, shape index: {}]  }
   0x1   :  { %s1438_s23 = smov 0   ;;  %s1440_s24 = smov 0  }
   0x2   :  { %s1442_s25 = smov 0  }
   0x3 LB: > { %s34_s26 = sadd.s32 1, %s1358_s23  ;;  %s41_s27 = sadd.s32 1, %s1362_s24  ;;  %s1366_s25 = sphi %s1442_s25, %s22_s25   ;;  %s1362_s24 = sphi %s1440_s24, %s1632_s24   ;;  %s1358_s23 = sphi %s1438_s23, %s1631_s23   ;;  %s1354_s22 = sphi %s1436_s22, %s1630_s22   ;;  %s1350_s21 = sphi %s1434_s21, %s1629_s21  }
   0x4   : > { %p35_p0 = scmp.ge.s32.totalorder %s34_s26, 2  ;;  %p1156_p1 = scmp.ge.s32.totalorder %s1366_s25, 1 }
   0x5   : > { %p426_p2 = scmp.lt.s32.totalorder %s1366_s25, 5 }
   0x6   : > { %s1634_s26 = smov (%p35_p0, %s34_s26), 0  ;;  %s1636_s27 = smov (!%p35_p0, %s41_s27), %s1362_s24 }
   0x7   : > { %p427_p3 = pnand %p1156_p1, %p426_p2  ;;  %p43_p4 = scmp.ge.s32.totalorder %s1636_s27, 2 }
   0x8   : > { %p519_p5 = scmp.lt.s32.totalorder (!%p427_p3), %s1350_s21, 1  ;;  %p499_p6 = scmp.lt.s32.totalorder (!%p427_p3), %s1354_s22, 1 }
   0x9   : > { %s1638_s27 = smov (%p43_p4, %s1636_s27), 0  ;;  %430 = sbr.rel (%p427_p3) target bundleno = 643 (0x283), region = 68 }
   0xe   : > { %v571_v0 = vld [vmem:[%s1619_s3] sm:$0xf]  ;;  %vm637_vm0 = vcmask 1043456   ;;  %v1368_v1 = vmov 0   ;;  %s1640_s21 = smov (!%p519_p5, %s1350_s21), 1  ;;  %s1642_s22 = smov (!%p499_p6, %s1354_s22), 1 }
   0xf   : > { %1320 = vset.pattern.permute.xlu0 %v1368_v1  ;;  %v639_v2 = vsel %vm637_vm0, %v571_v0, 0  ;;  %1321 = vset.pattern.permute.xlu1 %v1368_v1  ;;  %s1258_s30 = sshll.u32 %s1640_s21, 6  ;;  %s1163_s13 = sshll.u32 %s1640_s21, 3  ;;  %vm624_vm1 = vcmask 64512   ;;  %v1266_v16 = vld [vmem:[%s1622_s6 + $0x38] sm:$0xff]  ;;  %v1265_v24 = vld [vmem:[%s1622_s6 + $0x30] sm:$0xff] }
  0x10   : > { %648 = vmatpush.bf16.msra.mxu0 %v639_v2  ;;  %1322 = vset.pattern.permute.xlu2 %v1368_v1  ;;  %s526_s16 = scalar_lea.vmem %s1618_s2, %s1258_s30  ;;  %s1164_s17 = sshll.u32 %s1642_s22, 4  ;;  %v1264_v25 = vld [vmem:[%s1622_s6 + $0x28] sm:$0xff]  ;;  %v1263_v26 = vld [vmem:[%s1622_s6 + $0x20] sm:$0xff]  ;;  %v1262_v27 = vld [vmem:[%s1622_s6 + $0x18] sm:$0xff]  ;;  %vm948_vm2 = vcmask 523264   ;;  %vm998_vm3 = vcmask 23552  }
  0x11   : > { %v559_v3 = vld [vmem:[%s526_s16] sm:$0xff]  ;;  %s1473_s18 = sadd.s32 %s1164_s17, %s1163_s13  ;;  %s1256_s19 = sshll.u32 %s1642_s22, 6  ;;  %v561_v4 = vld [vmem:[%s526_s16 + $0x10] sm:$0xff]  ;;  %v560_v8 = vld [vmem:[%s526_s16 + $0x8] sm:$0xff]  ;;  %762 = vmatpush.bf16.msra.mxu1 %v1266_v16 }
  0x12   : > { %575 = vperm.xlu0 %1320, %v559_v3   ;;  %s506_s29 = scalar_lea.vmem %s1616_s0, %s1256_s19  ;;  %585 = vperm.xlu1 %1321, %v561_v4   ;;  %v562_v9 = vld [vmem:[%s526_s16 + $0x18] sm:$0xff]  ;;  %v565_v10 = vld [vmem:[%s526_s16 + $0x30] sm:$0xff]  ;;  %v563_v15 = vld [vmem:[%s526_s16 + $0x20] sm:$0xff]  ;;  %s1566_s21 = scalar_lea.vmem %s1617_s1, %s1256_s19 }
  0x13   : > { %v543_v5 = vld [vmem:[%s506_s29] sm:$0xff]  ;;  %v544_v6 = vld [vmem:[%s506_s29 + $0x8] sm:$0xff]  ;;  %v545_v11 = vld [vmem:[%s506_s29 + $0x10] sm:$0xff]  ;;  %595 = vperm.xlu2 %1322, %v563_v15   ;;  %s1165_s14 = sshll.u32 %s1473_s18, 3 }
  0x14   : > { %v567_v7 = vpack.c.bf16 %v544_v6, %v543_v5  ;;  %v546_v12 = vld [vmem:[%s506_s29 + $0x18] sm:$0xff]  ;;  %v564_v17 = vld [vmem:[%s526_s16 + $0x28] sm:$0xff]  ;;  %v547_v18 = vld [vmem:[%s506_s29 + $0x20] sm:$0xff]  ;;  %s1576_s22 = scalar_lea.vmem %s1628_s12, %s1165_s14 }
  0x15   : > { %v566_v13 = vld [vmem:[%s526_s16 + $0x38] sm:$0xff]  ;;  %v568_v14 = vpack.c.bf16 %v546_v12, %v545_v11  ;;  %v548_v19 = vld [vmem:[%s506_s29 + $0x28] sm:$0xff]  ;;  %v549_v21 = vld [vmem:[%s506_s29 + $0x30] sm:$0xff]  ;;  %763 = vmatpush.bf16.msra.mxu1 %v1265_v24 }
  0x16   : > { %1166 = vmatmul.msk.bf16.vlgmr.msra.gmra.mxu0 %vm624_vm1, %v567_v7  ;;  %v569_v20 = vpack.c.bf16 %v548_v19, %v547_v18  ;;  %v550_v22 = vld [vmem:[%s506_s29 + $0x38] sm:$0xff]  ;;  %v1261_v28 = vld [vmem:[%s1622_s6 + $0x10] sm:$0xff]  ;;  %v1260_v29 = vld [vmem:[%s1622_s6 + $0x8] sm:$0xff] }
  0x17   : > { %v570_v23 = vpack.c.bf16 %v550_v22, %v549_v21  ;;  %v1259_v30 = vld [vmem:[%s1622_s6] sm:$0xff]  ;;  %v1274_v62 = vld [vmem:[%s1624_s8 + $0x38] sm:$0xff]  ;;  %v1273_v63 = vld [vmem:[%s1624_s8 + $0x30] sm:$0xff] }
  0x18   : > { %v1323_v32 = vld [vmem:[%s1620_s4] ss:$0 sm:$0xff]  ;;  %871 = vmatpush.bf16.msra.mxu2 %v1274_v62  ;;  %v1272_v3 = vld [vmem:[%s1624_s8 + $0x28] sm:$0xff] }
  0x19   : > { %764 = vmatpush.bf16.msra.mxu1 %v1264_v25  ;;  %v1324_v36 = vld [vmem:[%s1621_s5] ss:$0 sm:$0xff]  ;;  %v1270_v25 = vld [vmem:[%s1624_s8 + $0x18] sm:$0xff] }
  0x1a   : > { %580 = vperm.xlu0 %1320, %v560_v8   ;;  %590 = vperm.xlu1 %1321, %v562_v9   ;;  %v1271_v8 = vld [vmem:[%s1624_s8 + $0x20] sm:$0xff] }
  0x1b   : > { %600 = vperm.xlu2 %1322, %v564_v17  }
  0x1c   : > { %872 = vmatpush.bf16.msra.mxu2 %v1273_v63  ;;  %v1326_v63 = vld [vmem:[%s1625_s9] ss:$0 sm:$0xff] }
  0x1d   : > { %765 = vmatpush.bf16.msra.mxu1 %v1263_v26  ;;  %v1269_v26 = vld [vmem:[%s1624_s8 + $0x10] sm:$0xff] }
  0x20   : > { %873 = vmatpush.bf16.msra.mxu2 %v1272_v3 }
  0x21   : > { %766 = vmatpush.bf16.msra.mxu1 %v1262_v27  ;;  %v1268_v27 = vld [vmem:[%s1624_s8 + $0x8] sm:$0xff] }
  0x22   : > { %605 = vperm.xlu0 %1320, %v565_v10   ;;  %610 = vperm.xlu1 %1321, %v566_v13  }
  0x24   : > { %874 = vmatpush.bf16.msra.mxu2 %v1271_v8 }
  0x25   : > { %767 = vmatpush.bf16.msra.mxu1 %v1261_v28  ;;  %v1267_v28 = vld [vmem:[%s1624_s8] sm:$0xff] }
  0x26   : > { %1167 = vmatmul.msk.bf16.gmra.mxu0 %vm624_vm1, %v568_v14 }
  0x28   : > { %875 = vmatpush.bf16.msra.mxu2 %v1270_v25 }
  0x29   : > { %768 = vmatpush.bf16.msra.mxu1 %v1260_v29 }
  0x2c   : > { %876 = vmatpush.bf16.msra.mxu2 %v1269_v26 }
  0x2d   : > { %769 = vmatpush.bf16.msra.mxu1 %v1259_v30  ;;  %v1325_v30 = vld [vmem:[%s1623_s7] ss:$0 sm:$0xff] }
  0x30   : > { %877 = vmatpush.bf16.msra.mxu2 %v1268_v27  ;;  %v1327_v27 = vld [vmem:[%s1627_s11] ss:$0 sm:$0xff] }
  0x34   : > { %878 = vmatpush.bf16.msra.mxu2 %v1267_v28  ;;  %v551_v28 = vld [vmem:[%s1566_s21] sm:$0xff] }
  0x36   : > { %1168 = vmatmul.msk.bf16.gmra.mxu0 %vm624_vm1, %v569_v20 }
  0x46   : > { %1169 = vmatmul.msk.bf16.gmra.mxu0 %vm624_vm1, %v570_v23 }
  0x6d   : > { %v596_v55 = vpop.permute.xlu2 %595 }
  0x6e   : > { %v620_v61 = vmul.f32 %v1323_v32, %v596_v55 }
  0x75   : > { %v601_v0 = vpop.permute.xlu2 %600 }
  0x76   : > { %v621_v2 = vmul.f32 %v1323_v32, %v601_v0 }
  0x84   : > { %v576_v31 = vpop.permute.xlu0 %575  ;;  %v586_v43 = vpop.permute.xlu1 %585 }
  0x85   : > { %v616_v34 = vmul.f32 %v1323_v32, %v576_v31  ;;  %v618_v48 = vmul.f32 %v1323_v32, %v586_v43 }
  0x8c   : > { %v581_v37 = vpop.permute.xlu0 %580  ;;  %v591_v50 = vpop.permute.xlu1 %590 }
  0x8d   : > { %v617_v38 = vmul.f32 %v1323_v32, %v581_v37  ;;  %v619_v51 = vmul.f32 %v1323_v32, %v591_v50 }
  0x93   : > { %v650_v33 = vpop.f32.mrf.mxu0 }
  0x94   : > { %v651_v35 = vadd.f32 %v650_v33, %v616_v34  ;;  %v606_v12 = vpop.permute.xlu0 %605  ;;  %v611_v15 = vpop.permute.xlu1 %610 }
  0x95   : > { %v622_v14 = vmul.f32 %v1323_v32, %v606_v12  ;;  %v623_v17 = vmul.f32 %v1323_v32, %v611_v15 }
  0x96   : > { %v674_v40 = vadd.f32 %v1324_v36, %v651_v35 }
  0x98   : > { %v682_v44 = vmax.f32 %v674_v40, 0.0 }
  0x9b   : > { %v652_v39 = vpop.f32.mrf.mxu0 }
  0x9c   : > { %v653_v41 = vadd.f32 %v652_v39, %v617_v38 }
  0x9e   : > { %v675_v42 = vadd.f32 %v1324_v36, %v653_v41 }
  0xa0   : > { %v683_v45 = vmax.f32 %v675_v42, 0.0 }
  0xa2   : > { %v690_v46 = vpack.c.bf16 %v683_v45, %v682_v44 }
  0xa3   : > { %v655_v47 = vpop.f32.mrf.mxu0 }
  0xa4   : > { %770 = vmatmul.bf16.vlgmr.msra.gmra.mxu1 %v690_v46  ;;  %v656_v49 = vadd.f32 %v655_v47, %v618_v48 }
  0xa6   : > { %v676_v53 = vadd.f32 %v1324_v36, %v656_v49 }
  0xa8   : > { %v684_v57 = vmax.f32 %v676_v53, 0.0 }
  0xab   : > { %v657_v52 = vpop.f32.mrf.mxu0 }
  0xac   : > { %v658_v54 = vadd.f32 %v657_v52, %v619_v51 }
  0xae   : > { %v677_v56 = vadd.f32 %v1324_v36, %v658_v54 }
  0xb0   : > { %v685_v58 = vmax.f32 %v677_v56, 0.0 }
  0xb2   : > { %v691_v59 = vpack.c.bf16 %v685_v58, %v684_v57  ;;  %v1278_v58 = vld [vmem:[%s1626_s10 + $0x18] sm:$0xff] }
  0xb3   : > { %v660_v60 = vpop.f32.mrf.mxu0  ;;  %965 = vmatpush.bf16.msra.mxu3 %v1278_v58 }
  0xb4   : > { %775 = vmatmul.bf16.gmra.mxu1 %v691_v59  ;;  %v661_v1 = vadd.f32 %v660_v60, %v620_v61  ;;  %v1277_v59 = vld [vmem:[%s1626_s10 + $0x10] sm:$0xff]  ;;  %v1276_v60 = vld [vmem:[%s1626_s10 + $0x8] sm:$0xff]  ;;  %v1275_v61 = vld [vmem:[%s1626_s10] sm:$0xff] }
  0xb6   : > { %v678_v5 = vadd.f32 %v1324_v36, %v661_v1 }
  0xb7   : > { %966 = vmatpush.bf16.msra.mxu3 %v1277_v59 }
  0xb8   : > { %v686_v9 = vmax.f32 %v678_v5, 0.0 }
  0xbb   : > { %v662_v4 = vpop.f32.mrf.mxu0  ;;  %967 = vmatpush.bf16.msra.mxu3 %v1276_v60 }
  0xbc   : > { %v663_v6 = vadd.f32 %v662_v4, %v621_v2 }
  0xbe   : > { %v679_v7 = vadd.f32 %v1324_v36, %v663_v6 }
  0xbf   : > { %968 = vmatpush.bf16.msra.mxu3 %v1275_v61 }
  0xc0   : > { %v687_v10 = vmax.f32 %v679_v7, 0.0 }
  0xc2   : > { %v692_v11 = vpack.c.bf16 %v687_v10, %v686_v9 }
  0xc3   : > { %v665_v13 = vpop.f32.mrf.mxu0 }
  0xc4   : > { %780 = vmatmul.bf16.gmra.mxu1 %v692_v11  ;;  %v666_v16 = vadd.f32 %v665_v13, %v622_v14 }
  0xc6   : > { %v680_v19 = vadd.f32 %v1324_v36, %v666_v16 }
  0xc8   : > { %v688_v22 = vmax.f32 %v680_v19, 0.0 }
  0xcb   : > { %v667_v18 = vpop.f32.mrf.mxu0 }
  0xcc   : > { %v668_v20 = vadd.f32 %v667_v18, %v623_v17 }
  0xce   : > { %v681_v21 = vadd.f32 %v1324_v36, %v668_v20 }
  0xd0   : > { %v689_v23 = vmax.f32 %v681_v21, 0.0 }
  0xd2   : > { %v693_v24 = vpack.c.bf16 %v689_v23, %v688_v22 }
  0xd4   : > { %785 = vmatmul.bf16.gmra.mxu1 %v693_v24 }
 0x121   : > { %v771_v29 = vpop.f32.mrf.mxu1 }
 0x122   : > { %v772_v31 = vadd.f32 %v1325_v30, %v771_v29 }
 0x124   : > { %v791_v34 = vmax.f32 %v772_v31, 0.0 }
 0x129   : > { %v773_v32 = vpop.f32.mrf.mxu1 }
 0x12a   : > { %v774_v33 = vadd.f32 %v1325_v30, %v773_v32  ;;  %v552_v32 = vld [vmem:[%s1566_s21 + $0x8] sm:$0xff] }
 0x12c   : > { %v792_v35 = vmax.f32 %v774_v33, 0.0 }
 0x12e   : > { %v799_v36 = vpack.c.bf16 %v792_v35, %v791_v34 }
 0x130   : > { %879 = vmatmul.bf16.vlgmr.msra.gmra.mxu2 %v799_v36  ;;  %v553_v36 = vld [vmem:[%s1566_s21 + $0x10] sm:$0xff] }
 0x131   : > { %v776_v37 = vpop.f32.mrf.mxu1 }
 0x132   : > { %v777_v38 = vadd.f32 %v1325_v30, %v776_v37 }
 0x134   : > { %v793_v41 = vmax.f32 %v777_v38, 0.0 }
 0x139   : > { %v778_v39 = vpop.f32.mrf.mxu1 }
 0x13a   : > { %v779_v40 = vadd.f32 %v1325_v30, %v778_v39 }
 0x13c   : > { %v794_v42 = vmax.f32 %v779_v40, 0.0  ;;  %v554_v40 = vld [vmem:[%s1566_s21 + $0x18] sm:$0xff] }
 0x13e   : > { %v800_v43 = vpack.c.bf16 %v794_v42, %v793_v41 }
 0x140   : > { %884 = vmatmul.bf16.gmra.mxu2 %v800_v43 }
 0x141   : > { %v781_v44 = vpop.f32.mrf.mxu1 }
 0x142   : > { %v782_v45 = vadd.f32 %v1325_v30, %v781_v44  ;;  %v555_v44 = vld [vmem:[%s1566_s21 + $0x20] sm:$0xff] }
 0x144   : > { %v795_v48 = vmax.f32 %v782_v45, 0.0 }
 0x149   : > { %v783_v46 = vpop.f32.mrf.mxu1 }
 0x14a   : > { %v784_v47 = vadd.f32 %v1325_v30, %v783_v46 }
 0x14c   : > { %v796_v49 = vmax.f32 %v784_v47, 0.0 }
 0x14e   : > { %v801_v50 = vpack.c.bf16 %v796_v49, %v795_v48  ;;  %v556_v48 = vld [vmem:[%s1566_s21 + $0x28] sm:$0xff] }
 0x150   : > { %889 = vmatmul.bf16.gmra.mxu2 %v801_v50 }
 0x151   : > { %v786_v51 = vpop.f32.mrf.mxu1 }
 0x152   : > { %v787_v52 = vadd.f32 %v1325_v30, %v786_v51 }
 0x154   : > { %v797_v55 = vmax.f32 %v787_v52, 0.0  ;;  %v557_v52 = vld [vmem:[%s1566_s21 + $0x30] sm:$0xff] }
 0x159   : > { %v788_v53 = vpop.f32.mrf.mxu1 }
 0x15a   : > { %v789_v54 = vadd.f32 %v1325_v30, %v788_v53 }
 0x15c   : > { %v798_v56 = vmax.f32 %v789_v54, 0.0 }
 0x15e   : > { %v802_v57 = vpack.c.bf16 %v798_v56, %v797_v55  ;;  %v558_v56 = vld [vmem:[%s1566_s21 + $0x38] sm:$0xff] }
 0x160   : > { %894 = vmatmul.bf16.gmra.mxu2 %v802_v57 }
 0x1b3   : > { %v880_v62 = vpop.f32.mrf.mxu2 }
 0x1b4   : > { %v881_v0 = vadd.f32 %v1326_v63, %v880_v62 }
 0x1b6   : > { %v900_v3 = vmax.f32 %v881_v0, 0.0 }
 0x1bb   : > { %v882_v1 = vpop.f32.mrf.mxu2 }
 0x1bc   : > { %v883_v2 = vadd.f32 %v1326_v63, %v882_v1 }
 0x1be   : > { %v901_v4 = vmax.f32 %v883_v2, 0.0 }
 0x1c0   : > { %v908_v5 = vpack.c.bf16 %v901_v4, %v900_v3 }
 0x1c2   : > { %1250 = vmatmul.msk.bf16.vlgmr.msra.gmra.mxu3 %vm948_vm2, %v908_v5 }
 0x1c3   : > { %v885_v6 = vpop.f32.mrf.mxu2 }
 0x1c4   : > { %v886_v7 = vadd.f32 %v1326_v63, %v885_v6 }
 0x1c6   : > { %v902_v10 = vmax.f32 %v886_v7, 0.0 }
 0x1cb   : > { %v887_v8 = vpop.f32.mrf.mxu2 }
 0x1cc   : > { %v888_v9 = vadd.f32 %v1326_v63, %v887_v8 }
 0x1ce   : > { %v903_v11 = vmax.f32 %v888_v9, 0.0 }
 0x1d0   : > { %v909_v12 = vpack.c.bf16 %v903_v11, %v902_v10 }
 0x1d2   : > { %1251 = vmatmul.msk.bf16.gmra.mxu3 %vm948_vm2, %v909_v12 }
 0x1d3   : > { %v890_v13 = vpop.f32.mrf.mxu2 }
 0x1d4   : > { %v891_v14 = vadd.f32 %v1326_v63, %v890_v13 }
 0x1d6   : > { %v904_v17 = vmax.f32 %v891_v14, 0.0 }
 0x1db   : > { %v892_v15 = vpop.f32.mrf.mxu2 }
 0x1dc   : > { %v893_v16 = vadd.f32 %v1326_v63, %v892_v15 }
 0x1de   : > { %v905_v18 = vmax.f32 %v893_v16, 0.0 }
 0x1e0   : > { %v910_v19 = vpack.c.bf16 %v905_v18, %v904_v17 }
 0x1e2   : > { %1252 = vmatmul.msk.bf16.gmra.mxu3 %vm948_vm2, %v910_v19 }
 0x1e3   : > { %v895_v20 = vpop.f32.mrf.mxu2 }
 0x1e4   : > { %v896_v21 = vadd.f32 %v1326_v63, %v895_v20 }
 0x1e6   : > { %v906_v24 = vmax.f32 %v896_v21, 0.0 }
 0x1eb   : > { %v897_v22 = vpop.f32.mrf.mxu2 }
 0x1ec   : > { %v898_v23 = vadd.f32 %v1326_v63, %v897_v22 }
 0x1ee   : > { %v907_v25 = vmax.f32 %v898_v23, 0.0 }
 0x1f0   : > { %v911_v26 = vpack.c.bf16 %v907_v25, %v906_v24 }
 0x1f2   : > { %1253 = vmatmul.msk.bf16.gmra.mxu3 %vm948_vm2, %v911_v26 }
 0x245   : > { %v970_v29 = vpop.f32.mrf.mxu3 }
 0x246   : > { %v971_v30 = vadd.f32 %v1327_v27, %v970_v29 }
 0x248   : > { %v990_v31 = vadd.f32 %v971_v30, %v551_v28 }
 0x24a   : > { %999 = vst.msk [vmem:[%s1576_s22] sm:$0xff] %vm998_vm3, %v990_v31 }
 0x24d   : > { %v972_v33 = vpop.f32.mrf.mxu3 }
 0x24e   : > { %v973_v34 = vadd.f32 %v1327_v27, %v972_v33 }
 0x250   : > { %v991_v35 = vadd.f32 %v973_v34, %v552_v32 }
 0x252   : > { %1000 = vst.msk [vmem:[%s1576_s22 + $0x8] sm:$0xff] %vm998_vm3, %v991_v35 }
 0x255   : > { %v975_v37 = vpop.f32.mrf.mxu3 }
 0x256   : > { %v976_v38 = vadd.f32 %v1327_v27, %v975_v37 }
 0x258   : > { %v992_v39 = vadd.f32 %v976_v38, %v553_v36 }
 0x25a   : > { %1001 = vst.msk [vmem:[%s1576_s22 + $0x10] sm:$0xff] %vm998_vm3, %v992_v39 }
 0x25d   : > { %v977_v41 = vpop.f32.mrf.mxu3 }
 0x25e   : > { %v978_v42 = vadd.f32 %v1327_v27, %v977_v41 }
 0x260   : > { %v993_v43 = vadd.f32 %v978_v42, %v554_v40 }
 0x262   : > { %1002 = vst.msk [vmem:[%s1576_s22 + $0x18] sm:$0xff] %vm998_vm3, %v993_v43 }
 0x265   : > { %v980_v45 = vpop.f32.mrf.mxu3 }
 0x266   : > { %v981_v46 = vadd.f32 %v1327_v27, %v980_v45 }
 0x268   : > { %v994_v47 = vadd.f32 %v981_v46, %v555_v44 }
 0x26a   : > { %1003 = vst.msk [vmem:[%s1576_s22 + $0x20] sm:$0xff] %vm998_vm3, %v994_v47 }
 0x26d   : > { %v982_v49 = vpop.f32.mrf.mxu3 }
 0x26e   : > { %v983_v50 = vadd.f32 %v1327_v27, %v982_v49 }
 0x270   : > { %v995_v51 = vadd.f32 %v983_v50, %v556_v48 }
 0x272   : > { %1004 = vst.msk [vmem:[%s1576_s22 + $0x28] sm:$0xff] %vm998_vm3, %v995_v51 }
 0x275   : > { %v985_v53 = vpop.f32.mrf.mxu3 }
 0x276   : > { %v986_v54 = vadd.f32 %v1327_v27, %v985_v53 }
 0x278   : > { %v996_v55 = vadd.f32 %v986_v54, %v557_v52 }
 0x27a   : > { %1005 = vst.msk [vmem:[%s1576_s22 + $0x30] sm:$0xff] %vm998_vm3, %v996_v55 }
 0x27d   : > { %v987_v57 = vpop.f32.mrf.mxu3 }
 0x27e   : > { %v988_v58 = vadd.f32 %v1327_v27, %v987_v57 }
 0x280   : > { %v997_v59 = vadd.f32 %v988_v58, %v558_v56 }
 0x282   : > { %1006 = vst.msk [vmem:[%s1576_s22 + $0x38] sm:$0xff] %vm998_vm3, %v997_v59 }
 0x283 PF: > { %s22_s25 = sadd.s32 1, %s1366_s25   ;;  %s1629_s21 = smov %s1358_s23 }
 0x284   : > { %p19_p7 = scmp.ge.s32.totalorder %s22_s25, 6   ;;  %s1630_s22 = smov %s1362_s24 }
 0x285   : > { %s1631_s23 = smov %s1634_s26  ;;  %s1632_s24 = smov %s1638_s27 }
 0x286   :  { %21 = sbr.rel (!%p19_p7) target bundleno = 3 (0x3), region = 104 }

</bundles_post_ra>
